<compile_context>
chip_gen: v7x
topology: tpu7x:2x2x1
jax: 0.10.0
libtpu: 0.0.40
codegen_flags: <defaults>
</compile_context>

<pallas_src>
import functools

import jax
import jax.numpy as jnp
import numpy as np
from jax.experimental import pallas as pl
from jax.experimental.pallas import tpu as pltpu

_LANE = 128          # vreg lane width: output last dim padded to a multiple of this
_SUBLANE_BF16 = 16   # bf16 packs 2 rows/sublane -> keep M tiles multiples of 16


def _round_up(x, m):
    return ((x + m - 1) // m) * m


@functools.lru_cache(maxsize=1)
def _vmem_capacity_bytes():
    """Generation-aware VMEM capacity (fallback: 64 MiB, the smallest = v7x)."""
    try:
        info = pltpu.get_tpu_info()
        for attr in ("vmem_capacity_bytes", "vmem_size_bytes", "vmem_bytes"):
            v = getattr(info, attr, None)
            if v:
                return int(v)
    except Exception:
        pass
    return 64 * 1024 * 1024


# ----------------------------- fast sine (VPU) ------------------------------
_PI_A = 3.1415927410125732       # float32(pi), exact in f32
_PI_B = -8.742277657347586e-08   # pi - float32(pi)
_INV_PI = 0.3183098861837907


def _fast_sin(x):
    """sin(x) in f32: pi-cycle range reduction + degree-9 odd polynomial.

    |abs err| <~ 1e-5 for the argument ranges SIREN produces.  Sine has no EUP
    slot on TPU, so its VALU cost is the kernel bottleneck; this is far cheaper
    than lax.sin's full range-reduction lowering.
    """
    n = jnp.round(x * _INV_PI)
    r = x - n * _PI_A
    r = r - n * _PI_B
    # parity of n -> sign flip, all-float (no int / bitwise ops needed)
    parity = n - 2.0 * jnp.floor(n * 0.5)
    sign = 1.0 - 2.0 * parity
    r2 = r * r
    p = -1.984126984126984e-04 + r2 * 2.755731922398589e-06
    p = 8.333333333333333e-03 + r2 * p
    p = -1.666666666666667e-01 + r2 * p
    return sign * (r + r * r2 * p)


# --------------------------------- kernel -----------------------------------
def _sine_kernel(x_ref, w_ref, b_ref, o_ref, *, use_fast_sin):
    """y = sin(x @ W' + b'); omega_0 already folded into W', b'."""
    # Per-tile cast (VPU, data already in VMEM) instead of a wrapper-side pass.
    x = x_ref[...].astype(w_ref.dtype)
    acc = jnp.dot(x, w_ref[...], preferred_element_type=jnp.float32)   # MXU
    acc = acc + b_ref[...]                      # (tm, N) + (1, N) broadcast, f32
    y = _fast_sin(acc) if use_fast_sin else jnp.sin(acc)
    o_ref[...] = y.astype(o_ref.dtype)


# ------------------------------ tile selection -------------------------------
def _choose_tile_m(m_rows, tile_m, k, n_pad, matmul_bytes, out_bytes, budget):
    """Pick an M tile: multiple of 16, as large as requested, >= 4 grid steps when
    there is enough work (>= 2 per v7x TensorCore), within the VMEM budget, and
    with an even step count when that lets both v7x cores do equal, smaller work."""
    m_pad16 = _round_up(max(m_rows, 1), _SUBLANE_BF16)
    tile_m = max(_SUBLANE_BF16, (tile_m // _SUBLANE_BF16) * _SUBLANE_BF16)
    tile_m = min(tile_m, m_pad16)

    def halve(t):
        return max(_SUBLANE_BF16, ((t // 2) // _SUBLANE_BF16) * _SUBLANE_BF16)

    min_steps = 4 if m_pad16 >= 4 * _SUBLANE_BF16 else (
        2 if m_pad16 >= 2 * _SUBLANE_BF16 else 1)
    while tile_m > _SUBLANE_BF16 and pl.cdiv(m_pad16, tile_m) < min_steps:
        tile_m = halve(tile_m)

    def vmem_est(tm):
        # double-buffered x (f32) & out tiles, SINGLE resident weight/bias,
        # plus in-kernel temporaries (bf16 x cast, f32 pre-activation / sine).
        return (2 * (tm * k * 4 + tm * n_pad * out_bytes)
                + (k * n_pad * matmul_bytes + n_pad * 4)
                + tm * k * matmul_bytes + 2 * tm * n_pad * 4)

    while tile_m > _SUBLANE_BF16 and vmem_est(tile_m) > budget:
        tile_m = halve(tile_m)

    # v7x core balance: odd step count (>1) -> shrink tile so steps become even
    # and each core's per-step work gets smaller.
    steps = pl.cdiv(m_pad16, tile_m)
    if steps > 1 and steps % 2 == 1:
        tile_even = _round_up(pl.cdiv(m_pad16, steps + 1), _SUBLANE_BF16)
        if _SUBLANE_BF16 <= tile_even < tile_m and vmem_est(tile_even) <= budget:
            tile_m = tile_even

    return tile_m, vmem_est(tile_m)


# ------------------------------ parameter prep -------------------------------
def prepare_sine_layer_params(weight, bias, omega_0=30.0,
                              matmul_dtype=jnp.bfloat16):
    """One-time parameter prep (hoist OUT of the per-call path): fold omega_0,
    pre-transpose to (in_features, out_features), pad out_features to a multiple
    of 128, cast the matmul operand to bf16 (bias stays f32).  Pass
    matmul_dtype=jnp.float32 if training-grade fidelity is required."""
    out_features, in_features = weight.shape
    n_pad = _round_up(out_features, _LANE)
    w_t = (jnp.float32(omega_0) * weight.astype(jnp.float32)).T        # (K, N)
    w_t = jnp.pad(w_t, ((0, 0), (0, n_pad - out_features))).astype(matmul_dtype)
    b_row = jnp.float32(omega_0) * bias.astype(jnp.float32)
    b_row = jnp.pad(b_row, (0, n_pad - out_features)).reshape(1, n_pad)
    return w_t, b_row


# --------------------------------- apply ------------------------------------
@functools.partial(
    jax.jit,
    static_argnames=("out_features", "tile_m", "vmem_budget_bytes", "out_dtype",
                     "use_fast_sin", "resident_in_vmem"))
def _sine_layer_apply(x, w_t, b_row, *, out_features, tile_m, vmem_budget_bytes,
                      out_dtype, use_fast_sin, resident_in_vmem):
    in_features = x.shape[-1]
    assert w_t.shape[0] == in_features
    n_pad = w_t.shape[1]
    lead = x.shape[:-1]

    matmul_dtype = w_t.dtype
    matmul_bytes = jnp.dtype(matmul_dtype).itemsize
    out_dt = jnp.dtype(out_dtype) if out_dtype is not None else x.dtype
    out_bytes = jnp.dtype(out_dt).itemsize

    x2d = x.reshape(-1, in_features)          # original dtype; cast is in-kernel
    m_rows = x2d.shape[0]

    cap = _vmem_capacity_bytes()
    budget = (vmem_budget_bytes if vmem_budget_bytes is not None
              else int(0.80 * cap))

    tile_m_eff, vmem_est = _choose_tile_m(
        m_rows, tile_m, in_features, n_pad, matmul_bytes, out_bytes, budget)
    m_pad = _round_up(m_rows, tile_m_eff)
    if m_pad != m_rows:
        # Only the (rare) M remainder is padded; padded rows are sliced off below.
        x2d = jnp.pad(x2d, ((0, m_pad - m_rows), (0, 0)))

    grid = (m_pad // tile_m_eff,)

    if resident_in_vmem:
        # Whole weight / bias live in VMEM once: no per-step pipelining, no dead
        # second buffer.
        w_spec = pl.BlockSpec(memory_space=pltpu.MemorySpace.VMEM)
        b_spec = pl.BlockSpec(memory_space=pltpu.MemorySpace.VMEM)
    else:
        # Fallback: blocked spec with a constant index map (resident, but Pallas
        # keeps a second pipeline buffer).
        w_spec = pl.BlockSpec((in_features, n_pad), lambda i: (0, 0))
        b_spec = pl.BlockSpec((1, n_pad), lambda i: (0, 0))

    cost = pl.CostEstimate(
        flops=2 * m_pad * in_features * n_pad,
        transcendentals=0 if use_fast_sin else m_pad * n_pad,
        bytes_accessed=(m_pad * in_features * jnp.dtype(x2d.dtype).itemsize
                        + in_features * n_pad * matmul_bytes
                        + n_pad * 4
                        + m_pad * n_pad * out_bytes))

    # Never under-report the actual VMEM requirement; stay under ~90% capacity.
    vmem_limit = int(min(int(0.90 * cap), max(vmem_est + (8 << 20), 32 << 20)))
    vmem_limit = max(vmem_limit, vmem_est + (2 << 20))

    kernel = functools.partial(_sine_kernel, use_fast_sin=use_fast_sin)

    out = pl.pallas_call(
        kernel,
        out_shape=jax.ShapeDtypeStruct((m_pad, n_pad), out_dt),
        grid_spec=pltpu.PrefetchScalarGridSpec(
            num_scalar_prefetch=0,
            grid=grid,
            in_specs=[
                pl.BlockSpec((tile_m_eff, in_features), lambda i: (i, 0)),
                w_spec,
                b_spec,
            ],
            out_specs=pl.BlockSpec((tile_m_eff, n_pad), lambda i: (i, 0)),
        ),
        compiler_params=pltpu.CompilerParams(
            dimension_semantics=("parallel",),
            vmem_limit_bytes=vmem_limit,
        ),
        cost_estimate=cost,
    )(x2d, w_t, b_row)

    out = out[:m_rows, :out_features]
    return out.reshape(*lead, out_features)


def sine_layer_apply(x, w_t, b_row, *, out_features, tile_m=512,
                     vmem_budget_bytes=None, out_dtype=None, use_fast_sin=True):
    """x: (..., in_features); w_t/b_row from prepare_sine_layer_params().
    out_dtype=jnp.bfloat16 halves the store-bound HBM traffic when the consumer
    is another bf16 matmul."""
    kwargs = dict(out_features=out_features, tile_m=tile_m,
                  vmem_budget_bytes=vmem_budget_bytes, out_dtype=out_dtype,
                  use_fast_sin=use_fast_sin)
    try:
        return _sine_layer_apply(x, w_t, b_row, resident_in_vmem=True, **kwargs)
    except Exception:
        # Robustness fallback if whole-array VMEM operands are unsupported on
        # this jax version.
        return _sine_layer_apply(x, w_t, b_row, resident_in_vmem=False, **kwargs)


def sine_layer(x, weight, bias, omega_0=30.0, *, tile_m=512,
               matmul_dtype=jnp.bfloat16, out_dtype=None, use_fast_sin=True):
    """Convenience wrapper: sin(omega_0 * (x @ weight.T + bias)).
    weight: (out_features, in_features) PyTorch layout; bias: (out_features,).
    For repeated calls, hoist prepare_sine_layer_params() and call
    sine_layer_apply() directly."""
    w_t, b_row = prepare_sine_layer_params(weight, bias, omega_0,
                                           matmul_dtype=matmul_dtype)
    return sine_layer_apply(x, w_t, b_row, out_features=weight.shape[0],
                            tile_m=tile_m, out_dtype=out_dtype,
                            use_fast_sin=use_fast_sin)


# --------------------------------- init / test -------------------------------
def init_sine_layer_params(key, in_features, out_features, is_first=False,
                           omega_0=30.0):
    """Deterministic SIREN init matching SineLayer.init_weights."""
    kw, kb = jax.random.split(key)
    if is_first:
        bound_w = 1.0 / in_features
    else:
        bound_w = np.sqrt(6.0 / in_features) / omega_0
    weight = jax.random.uniform(kw, (out_features, in_features),
                                minval=-bound_w, maxval=bound_w,
                                dtype=jnp.float32)
    # nn.Linear default bias init: U(-1/sqrt(in_features), 1/sqrt(in_features))
    bound_b = 1.0 / np.sqrt(in_features)
    bias = jax.random.uniform(kb, (out_features,),
                              minval=-bound_b, maxval=bound_b,
                              dtype=jnp.float32)
    return weight, bias


def _run_case(key, lead_shape, in_features, out_features, is_first, omega_0,
              check_bf16_out=False):
    k_x, k_p = jax.random.split(key)
    x = jax.random.normal(k_x, (*lead_shape, in_features), dtype=jnp.float32)
    weight, bias = init_sine_layer_params(k_p, in_features, out_features,
                                          is_first=is_first, omega_0=omega_0)

    # Parameter prep hoisted out of the per-call path.
    w_t, b_row = prepare_sine_layer_params(weight, bias, omega_0)
    y = sine_layer_apply(x, w_t, b_row, out_features=out_features)
    y = jax.block_until_ready(y)

    # Tight check: same bf16-rounded operands, f32 accumulate + f32 sine.
    x_bf = x.astype(jnp.bfloat16).astype(jnp.float32)
    w_bf = w_t[:, :out_features].astype(jnp.float32)   # omega-folded, bf16-rounded
    b_eff = b_row[0, :out_features]
    y_ref = jnp.sin(jnp.einsum("...i,io->...o", x_bf, w_bf,
                               precision=jax.lax.Precision.HIGHEST) + b_eff)
    np.testing.assert_allclose(np.asarray(y), np.asarray(y_ref),
                               rtol=1e-4, atol=5e-4)

    # Loose check against the exact f32 module semantics (bf16 MXU operands).
    y_f32 = jnp.sin(omega_0 * (jnp.einsum("...i,oi->...o", x, weight,
                                          precision=jax.lax.Precision.HIGHEST)
                               + bias))
    np.testing.assert_allclose(np.asarray(y), np.asarray(y_f32),
                               rtol=0.0, atol=0.1)

    if check_bf16_out:
        y16 = sine_layer_apply(x, w_t, b_row, out_features=out_features,
                               out_dtype=jnp.bfloat16)
        y16 = jax.block_until_ready(y16)
        assert y16.dtype == jnp.bfloat16
        np.testing.assert_allclose(np.asarray(jnp.asarray(y16, jnp.float32)),
                                   np.asarray(y_ref), rtol=0.0, atol=2e-2)


if __name__ == "__main__":
    key = jax.random.PRNGKey(0)
    k1, k2 = jax.random.split(key)

    # Small shape matching the module spec (batch=2, seq=8, features=32).
    _run_case(k1, (2, 8), in_features=32, out_features=32,
              is_first=True, omega_0=30.0)

    # Larger shape exercising M tiling (grid of 4 steps), N padding (96->128),
    # and the bf16-output store path.
    _run_case(k2, (2, 512), in_features=64, out_features=96,
              is_first=False, omega_0=30.0, check_bf16_out=True)

    print("KERNEL_OK")
</pallas_src>

<mosaic_0001>
module attributes {stable_mosaic.version = 11 : i64} {
  func.func @_sine_kernel(%arg0: i32, %arg1: memref<16x32xf32, #tpu.memory_space<vmem>>, %arg2: memref<32x128xbf16, #tpu.memory_space<vmem>>, %arg3: memref<1x128xf32, #tpu.memory_space<vmem>>, %arg4: memref<16x128xf32, #tpu.memory_space<vmem>>) attributes {dimension_semantics = [#tpu.dimension_semantics<parallel>], iteration_bounds = array<i64: 1>, scalar_prefetch = 0 : i64, scratch_operands = 0 : i64, tpu.core_type = #tpu.core_type<tc>, window_params = [{transform_indices = @transform_0, window_bounds = array<i64: 16, 32>}, {pipeline_mode = #tpu.pipeline_mode<synchronous>, transform_indices = @transform_1, window_bounds = array<i64: 32, 128>}, {pipeline_mode = #tpu.pipeline_mode<synchronous>, transform_indices = @transform_2, window_bounds = array<i64: 1, 128>}, {transform_indices = @transform_3, window_bounds = array<i64: 16, 128>}]} {
    %c0 = arith.constant 0 : index
    %c0_0 = arith.constant 0 : index
    %0 = vector.load %arg1[%c0, %c0_0] : memref<16x32xf32, #tpu.memory_space<vmem>>, vector<16x32xf32>
    %1 = arith.truncf %0 : vector<16x32xf32> to vector<16x32xbf16>
    %c0_1 = arith.constant 0 : index
    %c0_2 = arith.constant 0 : index
    %2 = vector.load %arg2[%c0_1, %c0_2] : memref<32x128xbf16, #tpu.memory_space<vmem>>, vector<32x128xbf16>
    %cst = arith.constant dense<0.000000e+00> : vector<16x128xf32>
    %3 = tpu.matmul %1, %2, %cst {dimension_numbers = #tpu.dot_dimension_numbers<[1], [0], [0], [1], [0, 0, 1, 1], [], []>} : vector<16x32xbf16>, vector<32x128xbf16>, vector<16x128xf32> -> vector<16x128xf32>
    %c0_3 = arith.constant 0 : index
    %c0_4 = arith.constant 0 : index
    %4 = vector.load %arg3[%c0_3, %c0_4] : memref<1x128xf32, #tpu.memory_space<vmem>>, vector<1x128xf32>
    %5 = vector.broadcast %4 : vector<1x128xf32> to vector<16x128xf32>
    %6 = arith.addf %3, %5 : vector<16x128xf32>
    %cst_5 = arith.constant 0.318309873 : f32
    %7 = vector.broadcast %cst_5 : f32 to vector<16x128xf32>
    %8 = arith.mulf %6, %7 : vector<16x128xf32>
    %9 = math.roundeven %8 : vector<16x128xf32>
    %cst_6 = arith.constant 3.14159274 : f32
    %10 = vector.broadcast %cst_6 : f32 to vector<16x128xf32>
    %11 = arith.mulf %9, %10 : vector<16x128xf32>
    %12 = arith.subf %6, %11 : vector<16x128xf32>
    %cst_7 = arith.constant -8.74227765E-8 : f32
    %13 = vector.broadcast %cst_7 : f32 to vector<16x128xf32>
    %14 = arith.mulf %9, %13 : vector<16x128xf32>
    %15 = arith.subf %12, %14 : vector<16x128xf32>
    %cst_8 = arith.constant 5.000000e-01 : f32
    %16 = vector.broadcast %cst_8 : f32 to vector<16x128xf32>
    %17 = arith.mulf %9, %16 : vector<16x128xf32>
    %18 = math.floor %17 : vector<16x128xf32>
    %cst_9 = arith.constant 2.000000e+00 : f32
    %19 = vector.broadcast %cst_9 : f32 to vector<16x128xf32>
    %20 = arith.mulf %19, %18 : vector<16x128xf32>
    %21 = arith.subf %9, %20 : vector<16x128xf32>
    %cst_10 = arith.constant 2.000000e+00 : f32
    %22 = vector.broadcast %cst_10 : f32 to vector<16x128xf32>
    %23 = arith.mulf %22, %21 : vector<16x128xf32>
    %cst_11 = arith.constant 1.000000e+00 : f32
    %24 = vector.broadcast %cst_11 : f32 to vector<16x128xf32>
    %25 = arith.subf %24, %23 : vector<16x128xf32>
    %26 = arith.mulf %15, %15 : vector<16x128xf32>
    %cst_12 = arith.constant 2.75573188E-6 : f32
    %27 = vector.broadcast %cst_12 : f32 to vector<16x128xf32>
    %28 = arith.mulf %26, %27 : vector<16x128xf32>
    %cst_13 = arith.constant -1.98412701E-4 : f32
    %29 = vector.broadcast %cst_13 : f32 to vector<16x128xf32>
    %30 = arith.addf %29, %28 : vector<16x128xf32>
    %31 = arith.mulf %26, %30 : vector<16x128xf32>
    %cst_14 = arith.constant 0.00833333377 : f32
    %32 = vector.broadcast %cst_14 : f32 to vector<16x128xf32>
    %33 = arith.addf %32, %31 : vector<16x128xf32>
    %34 = arith.mulf %26, %33 : vector<16x128xf32>
    %cst_15 = arith.constant -0.166666672 : f32
    %35 = vector.broadcast %cst_15 : f32 to vector<16x128xf32>
    %36 = arith.addf %35, %34 : vector<16x128xf32>
    %37 = arith.mulf %15, %26 : vector<16x128xf32>
    %38 = arith.mulf %37, %36 : vector<16x128xf32>
    %39 = arith.addf %15, %38 : vector<16x128xf32>
    %40 = arith.mulf %25, %39 : vector<16x128xf32>
    %c0_16 = arith.constant 0 : index
    %c0_17 = arith.constant 0 : index
    %41 = vector.load %arg4[%c0_16, %c0_17] : memref<16x128xf32, #tpu.memory_space<vmem>>, vector<16x128xf32>
    tpu.vector_store %arg4[%c0_16, %c0_17], %40 {strides = array<i32>} : memref<16x128xf32, #tpu.memory_space<vmem>>, vector<16x128xf32>,
    return
  }
  func.func @transform_0(%arg0: i32) -> (i32, i32) {
    %c0_i32 = arith.constant 0 : i32
    %c0_i32_0 = arith.constant 0 : i32
    return %arg0, %c0_i32 : i32, i32
  }
  func.func @transform_1(%arg0: i32) -> (i32, i32) {
    %c0_i32 = arith.constant 0 : i32
    %c0_i32_0 = arith.constant 0 : i32
    %c0_i32_1 = arith.constant 0 : i32
    return %c0_i32, %c0_i32_0 : i32, i32
  }
  func.func @transform_2(%arg0: i32) -> (i32, i32) {
    %c0_i32 = arith.constant 0 : i32
    %c0_i32_0 = arith.constant 0 : i32
    %c0_i32_1 = arith.constant 0 : i32
    return %c0_i32, %c0_i32_0 : i32, i32
  }
  func.func @transform_3(%arg0: i32) -> (i32, i32) {
    %c0_i32 = arith.constant 0 : i32
    %c0_i32_0 = arith.constant 0 : i32
    return %arg0, %c0_i32 : i32, i32
  }
}

module attributes {stable_mosaic.version = 11 : i64} {
  func.func @_sine_kernel(%arg0: i32, %arg1: memref<16x32xf32, #tpu.memory_space<vmem>>, %arg2: memref<32x128xbf16, #tpu.memory_space<vmem>>, %arg3: memref<1x128xf32, #tpu.memory_space<vmem>>, %arg4: memref<16x128xf32, #tpu.memory_space<vmem>>) attributes {dimension_semantics = [#tpu.dimension_semantics<parallel>], iteration_bounds = array<i64: 1>, scalar_prefetch = 0 : i64, scratch_operands = 0 : i64, tpu.core_type = #tpu.core_type<tc>, window_params = [{transform_indices = @transform_0, window_bounds = array<i64: 16, 32>}, {pipeline_mode = #tpu.pipeline_mode<synchronous>, transform_indices = @transform_1, window_bounds = array<i64: 32, 128>}, {pipeline_mode = #tpu.pipeline_mode<synchronous>, transform_indices = @transform_2, window_bounds = array<i64: 1, 128>}, {transform_indices = @transform_3, window_bounds = array<i64: 16, 128>}]} {
    %c0 = arith.constant 0 : index
    %c0_0 = arith.constant 0 : index
    %0 = vector.load %arg1[%c0, %c0_0] : memref<16x32xf32, #tpu.memory_space<vmem>>, vector<16x32xf32>
    %1 = arith.truncf %0 : vector<16x32xf32> to vector<16x32xbf16>
    %c0_1 = arith.constant 0 : index
    %c0_2 = arith.constant 0 : index
    %2 = vector.load %arg2[%c0_1, %c0_2] : memref<32x128xbf16, #tpu.memory_space<vmem>>, vector<32x128xbf16>
    %cst = arith.constant dense<0.000000e+00> : vector<16x128xf32>
    %3 = tpu.matmul %1, %2, %cst {dimension_numbers = #tpu.dot_dimension_numbers<[1], [0], [0], [1], [0, 0, 1, 1], [], []>} : vector<16x32xbf16>, vector<32x128xbf16>, vector<16x128xf32> -> vector<16x128xf32>
    %c0_3 = arith.constant 0 : index
    %c0_4 = arith.constant 0 : index
    %4 = vector.load %arg3[%c0_3, %c0_4] : memref<1x128xf32, #tpu.memory_space<vmem>>, vector<1x128xf32>
    %5 = vector.broadcast %4 : vector<1x128xf32> to vector<16x128xf32>
    %6 = arith.addf %3, %5 : vector<16x128xf32>
    %cst_5 = arith.constant 0.318309873 : f32
    %7 = vector.broadcast %cst_5 : f32 to vector<16x128xf32>
    %8 = arith.mulf %6, %7 : vector<16x128xf32>
    %9 = math.roundeven %8 : vector<16x128xf32>
    %cst_6 = arith.constant 3.14159274 : f32
    %10 = vector.broadcast %cst_6 : f32 to vector<16x128xf32>
    %11 = arith.mulf %9, %10 : vector<16x128xf32>
    %12 = arith.subf %6, %11 : vector<16x128xf32>
    %cst_7 = arith.constant -8.74227765E-8 : f32
    %13 = vector.broadcast %cst_7 : f32 to vector<16x128xf32>
    %14 = arith.mulf %9, %13 : vector<16x128xf32>
    %15 = arith.subf %12, %14 : vector<16x128xf32>
    %cst_8 = arith.constant 5.000000e-01 : f32
    %16 = vector.broadcast %cst_8 : f32 to vector<16x128xf32>
    %17 = arith.mulf %9, %16 : vector<16x128xf32>
    %18 = math.floor %17 : vector<16x128xf32>
    %cst_9 = arith.constant 2.000000e+00 : f32
    %19 = vector.broadcast %cst_9 : f32 to vector<16x128xf32>
    %20 = arith.mulf %19, %18 : vector<16x128xf32>
    %21 = arith.subf %9, %20 : vector<16x128xf32>
    %cst_10 = arith.constant 2.000000e+00 : f32
    %22 = vector.broadcast %cst_10 : f32 to vector<16x128xf32>
    %23 = arith.mulf %22, %21 : vector<16x128xf32>
    %cst_11 = arith.constant 1.000000e+00 : f32
    %24 = vector.broadcast %cst_11 : f32 to vector<16x128xf32>
    %25 = arith.subf %24, %23 : vector<16x128xf32>
    %26 = arith.mulf %15, %15 : vector<16x128xf32>
    %cst_12 = arith.constant 2.75573188E-6 : f32
    %27 = vector.broadcast %cst_12 : f32 to vector<16x128xf32>
    %28 = arith.mulf %26, %27 : vector<16x128xf32>
    %cst_13 = arith.constant -1.98412701E-4 : f32
    %29 = vector.broadcast %cst_13 : f32 to vector<16x128xf32>
    %30 = arith.addf %29, %28 : vector<16x128xf32>
    %31 = arith.mulf %26, %30 : vector<16x128xf32>
    %cst_14 = arith.constant 0.00833333377 : f32
    %32 = vector.broadcast %cst_14 : f32 to vector<16x128xf32>
    %33 = arith.addf %32, %31 : vector<16x128xf32>
    %34 = arith.mulf %26, %33 : vector<16x128xf32>
    %cst_15 = arith.constant -0.166666672 : f32
    %35 = vector.broadcast %cst_15 : f32 to vector<16x128xf32>
    %36 = arith.addf %35, %34 : vector<16x128xf32>
    %37 = arith.mulf %15, %26 : vector<16x128xf32>
    %38 = arith.mulf %37, %36 : vector<16x128xf32>
    %39 = arith.addf %15, %38 : vector<16x128xf32>
    %40 = arith.mulf %25, %39 : vector<16x128xf32>
    %c0_16 = arith.constant 0 : index
    %c0_17 = arith.constant 0 : index
    %41 = vector.load %arg4[%c0_16, %c0_17] : memref<16x128xf32, #tpu.memory_space<vmem>>, vector<16x128xf32>
    tpu.vector_store %arg4[%c0_16, %c0_17], %40 {strides = array<i32>} : memref<16x128xf32, #tpu.memory_space<vmem>>, vector<16x128xf32>,
    return
  }
  func.func @transform_0(%arg0: i32) -> (i32, i32) {
    %c0_i32 = arith.constant 0 : i32
    %c0_i32_0 = arith.constant 0 : i32
    return %arg0, %c0_i32 : i32, i32
  }
  func.func @transform_1(%arg0: i32) -> (i32, i32) {
    %c0_i32 = arith.constant 0 : i32
    %c0_i32_0 = arith.constant 0 : i32
    %c0_i32_1 = arith.constant 0 : i32
    return %c0_i32, %c0_i32_0 : i32, i32
  }
  func.func @transform_2(%arg0: i32) -> (i32, i32) {
    %c0_i32 = arith.constant 0 : i32
    %c0_i32_0 = arith.constant 0 : i32
    %c0_i32_1 = arith.constant 0 : i32
    return %c0_i32, %c0_i32_0 : i32, i32
  }
  func.func @transform_3(%arg0: i32) -> (i32, i32) {
    %c0_i32 = arith.constant 0 : i32
    %c0_i32_0 = arith.constant 0 : i32
    return %arg0, %c0_i32 : i32, i32
  }
}

</mosaic_0001>

<bundles_post_ra>
// kernel: _sine_layer_apply.1
= control target key start
LH: loop header
LB: loop body
LE: loop exit
PB: predicated region body
PF: predicated region fallthrough
CT: control target
= control target key end

     0   :  { %8 = vsyncpa [#allocation3], 0  ;;  %s304_s0 = inlined_call_operand.hbm [shape: f32[16,32], index: 0, kind: input, shape index: {}]   ;;  %s305_s1 = inlined_call_operand.hbm [shape: bf16[32,128], index: 1, kind: input, shape index: {}]   ;;  %s306_s2 = inlined_call_operand.vmem [shape: f32[1,128], index: 2, kind: input, shape index: {}]   ;;  %s307_s3 = inlined_call_operand.vmem [shape: f32[16,128], index: 3, kind: output, shape index: {}]  }
   0x1   :  { %9 = vsyncpa [#allocation5], 0  ;;  %s243_s12 = smov [#allocation2]   ;;  %s195_s16 = scalar_lea.hbm %s304_s0, 256 }
   0x2   :  { %s15_s13 = sshll.u32 %s243_s12, 4  ;;  %p196_p0 = scmp.ne.s32.totalorder %s304_s0, %s195_s16  ;;  %s16_s13 = int_to_ptr.vmem [resolvable:$true] %s15_s13 }
   0x3   :  { %p199_p1 = scmp.lt.u32.totalorder %s195_s16, %s304_s0 }
   0x5   :  { %p201_p2 = pnand %p199_p1, %p196_p0 }
   0x7   :  { %204 = shalt.err (!%p201_p2)
}
   0x8   :  { %s205_s21 = scalar_lea.vmem %s16_s13, 256  ;;  %p210_p4 = scmp.lt.s32.totalorder %s16_s13, %s16_s13 }
   0x9   :  { %p206_p3 = scmp.ne.s32.totalorder %s16_s13, %s205_s21  ;;  %p211_p5 = scmp.lt.s32.totalorder %s205_s21, %s205_s21 }
   0xb   :  { %p212_p6 = por %p211_p5, %p210_p4 }
   0xd   :  { %p213_p7 = pnand %p212_p6, %p206_p3 }
   0xf   :  { %216 = shalt.err (!%p213_p7)
}
  0x10   :  { %s244_s22 = smov 128   ;;  %s245_s23 = smov 8  }
  0x11   :  { %21 = dma.hbm_to_vmem [thread:$0]  %s304_s0, 256, %s16_s13, [#allocation3], %s244_s22, %s244_s22, %s245_s23  }
  0x12   :  { %s246_s26 = smov [#allocation4]   ;;  %s217_s30 = scalar_lea.hbm %s305_s1, 256 }
  0x13   :  { %s27_s27 = sshll.u32 %s246_s26, 4  ;;  %p218_p8 = scmp.ne.s32.totalorder %s305_s1, %s217_s30  ;;  %s28_s27 = int_to_ptr.vmem [resolvable:$true] %s27_s27 }
  0x14   :  { %p221_p9 = scmp.lt.u32.totalorder %s217_s30, %s305_s1 }
  0x16   :  { %p223_p10 = pnand %p221_p9, %p218_p8 }
  0x18   :  { %226 = shalt.err (!%p223_p10)
}
  0x19   :  { %s227_s8 = scalar_lea.vmem %s28_s27, 256  ;;  %p232_p12 = scmp.lt.s32.totalorder %s28_s27, %s28_s27 }
  0x1a   :  { %p228_p11 = scmp.ne.s32.totalorder %s28_s27, %s227_s8  ;;  %p233_p13 = scmp.lt.s32.totalorder %s227_s8, %s227_s8 }
  0x1c   :  { %p234_p0 = por %p233_p13, %p232_p12 }
  0x1e   :  { %p235_p1 = pnand %p234_p0, %p228_p11 }
  0x20   :  { %238 = shalt.err (!%p235_p1)
}
  0x21   :  { %s247_s0 = smov 64   ;;  %s248_s9 = smov 4  }
  0x22   :  { %33 = dma.hbm_to_vmem [thread:$0]  %s305_s1, 256, %s28_s27, [#allocation5], %s247_s0, %s247_s0, %s248_s9  }
  0x23   :  { %239 = dma.done.wait [#allocation3], 256  }
  0x24   :  { %240 = vsyncadd [#allocation3], 4294967040 }
  0x25   :  { %241 = dma.done.wait [#allocation5], 256  }
  0x26   :  { %242 = vsyncadd [#allocation5], 4294967040  ;;  %v249_v0 = vmov 0.0   ;;  %vm250_vm0 = vmmov 0   ;;  %v193_v1 = vld [vmem:[#allocation4] sm:$0xff]   ;;  %v194_v2 = vld [vmem:[#allocation4 + $0x8] sm:$0xff]  }
  0x27   :  { %175 = vmatprep.subr.bf16.mxu0 %v249_v0  ;;  %179 = vmatprep.mubr.msk.bf16.mxu0 %vm250_vm0, %v249_v0  ;;  %v43_v3 = vld [vmem:[#allocation2] sm:$0xff]  ;;  %v44_v4 = vld [vmem:[#allocation2 + $0x8] sm:$0xff]  ;;  %vm69_vm1 = vcmask 261120  }
  0x28   :  { %176 = vmatpush3.bf16.msra.mxu0 %v193_v1  ;;  %v45_v5 = vpack.c.bf16 %v44_v4, %v43_v3  ;;  %v168_v6 = vld [vmem:[%s306_s2] ss:$0 sm:$0xff] }
  0x29   :  { %177 = vmatprep.subr.bf16.mxu0 %v249_v0 }
  0x2c   :  { %178 = vmatpush3.bf16.msra.mxu0 %v194_v2 }
  0x2f   :  { %180 = vmatmul.mubr.msk.bf16.vlgmr.msra.gmra.mrb[0].mxu0 %vm69_vm1, %v45_v5 }
 0x102   :  { %v107_v7 = vpop.f32.mrb[0].mxu0 }
 0x103   :  { %v108_v8 = vadd.f32 %v168_v6, %v107_v7  ;;  %v181_v9 = vpop.f32.mrb[1].mxu0 }
 0x104   :  { %v110_v10 = vpop.f32.mrb[2].mxu0 }
 0x105   :  { %v114_v11 = vmul.f32 0.31830987, %v108_v8  ;;  %v111_v12 = vadd.f32 %v168_v6, %v110_v10  ;;  %v182_v13 = vpop.f32.mrb[3].mxu0 }
 0x107   :  { %v183_v14 = vround.rtne.f32 %v114_v11  ;;  %v115_v15 = vmul.f32 0.31830987, %v111_v12 }
 0x109   :  { %v118_v16 = vmul.f32 3.1415927, %v183_v14  ;;  %v184_v17 = vround.rtne.f32 %v115_v15  ;;  %v122_v19 = vmul.f32 -8.742278e-08, %v183_v14  ;;  %v126_v20 = vmul.f32 0.5, %v183_v14 }
 0x10b   :  { %v120_v18 = vsub.f32 %v108_v8, %v118_v16  ;;  %v119_v21 = vmul.f32 3.1415927, %v184_v17  ;;  %v123_v24 = vmul.f32 -8.742278e-08, %v184_v17  ;;  %v127_v25 = vmul.f32 0.5, %v184_v17 }
 0x10c   :  { %v128_v26 = vfloor.f32 %v126_v20 }
 0x10d   :  { %v124_v22 = vsub.f32 %v120_v18, %v122_v19  ;;  %v121_v23 = vsub.f32 %v111_v12, %v119_v21  ;;  %v129_v30 = vfloor.f32 %v127_v25 }
 0x10e   :  { %v130_v32 = vmul.f32 2.0, %v128_v26 }
 0x10f   :  { %v138_v27 = vmul.f32 %v124_v22, %v124_v22  ;;  %v125_v28 = vsub.f32 %v121_v23, %v123_v24  ;;  %v131_v36 = vmul.f32 2.0, %v129_v30 }
 0x110   :  { %v132_v38 = vsub.f32 %v183_v14, %v130_v32 }
 0x111   :  { %v140_v29 = vmul.f32 2.7557319e-06, %v138_v27  ;;  %v139_v31 = vmul.f32 %v125_v28, %v125_v28  ;;  %v133_v42 = vsub.f32 %v184_v17, %v131_v36  ;;  %v152_v46 = vmul.f32 %v138_v27, %v124_v22 }
 0x112   :  { %v134_v44 = vmul.f32 2.0, %v132_v38 }
 0x113   :  { %v142_v33 = vadd.f32 -0.0001984127, %v140_v29  ;;  %v141_v34 = vmul.f32 2.7557319e-06, %v139_v31  ;;  %v135_v49 = vmul.f32 2.0, %v133_v42  ;;  %v153_v51 = vmul.f32 %v139_v31, %v125_v28 }
 0x114   :  { %v136_v52 = vsub.f32 1.0, %v134_v44 }
 0x115   :  { %v144_v35 = vmul.f32 %v142_v33, %v138_v27  ;;  %v143_v37 = vadd.f32 -0.0001984127, %v141_v34  ;;  %v137_v56 = vsub.f32 1.0, %v135_v49 }
 0x117   :  { %v146_v39 = vadd.f32 0.008333334, %v144_v35  ;;  %v145_v40 = vmul.f32 %v143_v37, %v139_v31 }
 0x119   :  { %v148_v41 = vmul.f32 %v146_v39, %v138_v27  ;;  %v147_v43 = vadd.f32 0.008333334, %v145_v40 }
 0x11b   :  { %v150_v45 = vadd.f32 -0.16666667, %v148_v41  ;;  %v149_v47 = vmul.f32 %v147_v43, %v139_v31 }
 0x11d   :  { %v154_v48 = vmul.f32 %v152_v46, %v150_v45  ;;  %v151_v50 = vadd.f32 -0.16666667, %v149_v47 }
 0x11f   :  { %v156_v53 = vadd.f32 %v154_v48, %v124_v22  ;;  %v155_v54 = vmul.f32 %v153_v51, %v151_v50 }
 0x121   :  { %v158_v55 = vmul.f32 %v156_v53, %v136_v52  ;;  %v157_v57 = vadd.f32 %v155_v54, %v125_v28 }
 0x123   :  { %160 = vst [vmem:[%s307_s3] sm:$0xff] %v158_v55  ;;  %v159_v58 = vmul.f32 %v157_v57, %v137_v56 }
 0x125   :  { %161 = vst [vmem:[%s307_s3 + $0x8] sm:$0xff] %v159_v58 }
 0x126   :  { %166 = vsyncpa [#allocation3], 1 }
 0x127   :  { %167 = vsyncpa [#allocation5], 1 }

// kernel: _sine_layer_apply.1
= control target key start
LH: loop header
LB: loop body
LE: loop exit
PB: predicated region body
PF: predicated region fallthrough
CT: control target
= control target key end

     0   :  { %8 = vsyncpa [#allocation3], 0  ;;  %s304_s0 = inlined_call_operand.hbm [shape: f32[16,32], index: 0, kind: input, shape index: {}]   ;;  %s305_s1 = inlined_call_operand.hbm [shape: bf16[32,128], index: 1, kind: input, shape index: {}]   ;;  %s306_s2 = inlined_call_operand.vmem [shape: f32[1,128], index: 2, kind: input, shape index: {}]   ;;  %s307_s3 = inlined_call_operand.vmem [shape: f32[16,128], index: 3, kind: output, shape index: {}]  }
   0x1   :  { %9 = vsyncpa [#allocation5], 0  ;;  %s243_s12 = smov [#allocation2]   ;;  %s195_s16 = scalar_lea.hbm %s304_s0, 256 }
   0x2   :  { %s15_s13 = sshll.u32 %s243_s12, 4  ;;  %p196_p0 = scmp.ne.s32.totalorder %s304_s0, %s195_s16  ;;  %s16_s13 = int_to_ptr.vmem [resolvable:$true] %s15_s13 }
   0x3   :  { %p199_p1 = scmp.lt.u32.totalorder %s195_s16, %s304_s0 }
   0x5   :  { %p201_p2 = pnand %p199_p1, %p196_p0 }
   0x7   :  { %204 = shalt.err (!%p201_p2)
}
   0x8   :  { %s205_s21 = scalar_lea.vmem %s16_s13, 256  ;;  %p210_p4 = scmp.lt.s32.totalorder %s16_s13, %s16_s13 }
   0x9   :  { %p206_p3 = scmp.ne.s32.totalorder %s16_s13, %s205_s21  ;;  %p211_p5 = scmp.lt.s32.totalorder %s205_s21, %s205_s21 }
   0xb   :  { %p212_p6 = por %p211_p5, %p210_p4 }
   0xd   :  { %p213_p7 = pnand %p212_p6, %p206_p3 }
   0xf   :  { %216 = shalt.err (!%p213_p7)
}
  0x10   :  { %s244_s22 = smov 128   ;;  %s245_s23 = smov 8  }
  0x11   :  { %21 = dma.hbm_to_vmem [thread:$0]  %s304_s0, 256, %s16_s13, [#allocation3], %s244_s22, %s244_s22, %s245_s23  }
  0x12   :  { %s246_s26 = smov [#allocation4]   ;;  %s217_s30 = scalar_lea.hbm %s305_s1, 256 }
  0x13   :  { %s27_s27 = sshll.u32 %s246_s26, 4  ;;  %p218_p8 = scmp.ne.s32.totalorder %s305_s1, %s217_s30  ;;  %s28_s27 = int_to_ptr.vmem [resolvable:$true] %s27_s27 }
  0x14   :  { %p221_p9 = scmp.lt.u32.totalorder %s217_s30, %s305_s1 }
  0x16   :  { %p223_p10 = pnand %p221_p9, %p218_p8 }
  0x18   :  { %226 = shalt.err (!%p223_p10)
}
  0x19   :  { %s227_s8 = scalar_lea.vmem %s28_s27, 256  ;;  %p232_p12 = scmp.lt.s32.totalorder %s28_s27, %s28_s27 }
  0x1a   :  { %p228_p11 = scmp.ne.s32.totalorder %s28_s27, %s227_s8  ;;  %p233_p13 = scmp.lt.s32.totalorder %s227_s8, %s227_s8 }
  0x1c   :  { %p234_p0 = por %p233_p13, %p232_p12 }
  0x1e   :  { %p235_p1 = pnand %p234_p0, %p228_p11 }
  0x20   :  { %238 = shalt.err (!%p235_p1)
}
  0x21   :  { %s247_s0 = smov 64   ;;  %s248_s9 = smov 4  }
  0x22   :  { %33 = dma.hbm_to_vmem [thread:$0]  %s305_s1, 256, %s28_s27, [#allocation5], %s247_s0, %s247_s0, %s248_s9  }
  0x23   :  { %239 = dma.done.wait [#allocation3], 256  }
  0x24   :  { %240 = vsyncadd [#allocation3], 4294967040 }
  0x25   :  { %241 = dma.done.wait [#allocation5], 256  }
  0x26   :  { %242 = vsyncadd [#allocation5], 4294967040  ;;  %v249_v0 = vmov 0.0   ;;  %vm250_vm0 = vmmov 0   ;;  %v193_v1 = vld [vmem:[#allocation4] sm:$0xff]   ;;  %v194_v2 = vld [vmem:[#allocation4 + $0x8] sm:$0xff]  }
  0x27   :  { %175 = vmatprep.subr.bf16.mxu0 %v249_v0  ;;  %179 = vmatprep.mubr.msk.bf16.mxu0 %vm250_vm0, %v249_v0  ;;  %v43_v3 = vld [vmem:[#allocation2] sm:$0xff]  ;;  %v44_v4 = vld [vmem:[#allocation2 + $0x8] sm:$0xff]  ;;  %vm69_vm1 = vcmask 261120  }
  0x28   :  { %176 = vmatpush3.bf16.msra.mxu0 %v193_v1  ;;  %v45_v5 = vpack.c.bf16 %v44_v4, %v43_v3  ;;  %v168_v6 = vld [vmem:[%s306_s2] ss:$0 sm:$0xff] }
  0x29   :  { %177 = vmatprep.subr.bf16.mxu0 %v249_v0 }
  0x2c   :  { %178 = vmatpush3.bf16.msra.mxu0 %v194_v2 }
  0x2f   :  { %180 = vmatmul.mubr.msk.bf16.vlgmr.msra.gmra.mrb[0].mxu0 %vm69_vm1, %v45_v5 }
 0x102   :  { %v107_v7 = vpop.f32.mrb[0].mxu0 }
 0x103   :  { %v108_v8 = vadd.f32 %v168_v6, %v107_v7  ;;  %v181_v9 = vpop.f32.mrb[1].mxu0 }
 0x104   :  { %v110_v10 = vpop.f32.mrb[2].mxu0 }
 0x105   :  { %v114_v11 = vmul.f32 0.31830987, %v108_v8  ;;  %v111_v12 = vadd.f32 %v168_v6, %v110_v10  ;;  %v182_v13 = vpop.f32.mrb[3].mxu0 }
 0x107   :  { %v183_v14 = vround.rtne.f32 %v114_v11  ;;  %v115_v15 = vmul.f32 0.31830987, %v111_v12 }
 0x109   :  { %v118_v16 = vmul.f32 3.1415927, %v183_v14  ;;  %v184_v17 = vround.rtne.f32 %v115_v15  ;;  %v122_v19 = vmul.f32 -8.742278e-08, %v183_v14  ;;  %v126_v20 = vmul.f32 0.5, %v183_v14 }
 0x10b   :  { %v120_v18 = vsub.f32 %v108_v8, %v118_v16  ;;  %v119_v21 = vmul.f32 3.1415927, %v184_v17  ;;  %v123_v24 = vmul.f32 -8.742278e-08, %v184_v17  ;;  %v127_v25 = vmul.f32 0.5, %v184_v17 }
 0x10c   :  { %v128_v26 = vfloor.f32 %v126_v20 }
 0x10d   :  { %v124_v22 = vsub.f32 %v120_v18, %v122_v19  ;;  %v121_v23 = vsub.f32 %v111_v12, %v119_v21  ;;  %v129_v30 = vfloor.f32 %v127_v25 }
 0x10e   :  { %v130_v32 = vmul.f32 2.0, %v128_v26 }
 0x10f   :  { %v138_v27 = vmul.f32 %v124_v22, %v124_v22  ;;  %v125_v28 = vsub.f32 %v121_v23, %v123_v24  ;;  %v131_v36 = vmul.f32 2.0, %v129_v30 }
 0x110   :  { %v132_v38 = vsub.f32 %v183_v14, %v130_v32 }
 0x111   :  { %v140_v29 = vmul.f32 2.7557319e-06, %v138_v27  ;;  %v139_v31 = vmul.f32 %v125_v28, %v125_v28  ;;  %v133_v42 = vsub.f32 %v184_v17, %v131_v36  ;;  %v152_v46 = vmul.f32 %v138_v27, %v124_v22 }
 0x112   :  { %v134_v44 = vmul.f32 2.0, %v132_v38 }
 0x113   :  { %v142_v33 = vadd.f32 -0.0001984127, %v140_v29  ;;  %v141_v34 = vmul.f32 2.7557319e-06, %v139_v31  ;;  %v135_v49 = vmul.f32 2.0, %v133_v42  ;;  %v153_v51 = vmul.f32 %v139_v31, %v125_v28 }
 0x114   :  { %v136_v52 = vsub.f32 1.0, %v134_v44 }
 0x115   :  { %v144_v35 = vmul.f32 %v142_v33, %v138_v27  ;;  %v143_v37 = vadd.f32 -0.0001984127, %v141_v34  ;;  %v137_v56 = vsub.f32 1.0, %v135_v49 }
 0x117   :  { %v146_v39 = vadd.f32 0.008333334, %v144_v35  ;;  %v145_v40 = vmul.f32 %v143_v37, %v139_v31 }
 0x119   :  { %v148_v41 = vmul.f32 %v146_v39, %v138_v27  ;;  %v147_v43 = vadd.f32 0.008333334, %v145_v40 }
 0x11b   :  { %v150_v45 = vadd.f32 -0.16666667, %v148_v41  ;;  %v149_v47 = vmul.f32 %v147_v43, %v139_v31 }
 0x11d   :  { %v154_v48 = vmul.f32 %v152_v46, %v150_v45  ;;  %v151_v50 = vadd.f32 -0.16666667, %v149_v47 }
 0x11f   :  { %v156_v53 = vadd.f32 %v154_v48, %v124_v22  ;;  %v155_v54 = vmul.f32 %v153_v51, %v151_v50 }
 0x121   :  { %v158_v55 = vmul.f32 %v156_v53, %v136_v52  ;;  %v157_v57 = vadd.f32 %v155_v54, %v125_v28 }
 0x123   :  { %160 = vst [vmem:[%s307_s3] sm:$0xff] %v158_v55  ;;  %v159_v58 = vmul.f32 %v157_v57, %v137_v56 }
 0x125   :  { %161 = vst [vmem:[%s307_s3 + $0x8] sm:$0xff] %v159_v58 }
 0x126   :  { %166 = vsyncpa [#allocation3], 1 }
 0x127   :  { %167 = vsyncpa [#allocation5], 1 }

</bundles_post_ra>
